<compile_context>
chip_gen: v5e
topology: v5e:2x2
jax: 0.10.0
libtpu: 0.0.40
codegen_flags: <defaults>
</compile_context>

<pallas_src>
import jax
import jax.numpy as jnp
from jax.experimental import pallas as pl
from jax.experimental.pallas import tpu as pltpu


def _round_up(x, m):
    return ((x + m - 1) // m) * m


def _agg_kernel(x_ref, w_ref, b_ref, o_ref):
    # Fused: matmul (MXU) -> bias -> relu on a lane-dense (pixels on lanes) block.
    # Shapes: x_ref (C, tn), w_ref (Cout, C), b_ref (Cout, 1), o_ref (Cout, tn).
    y = jnp.dot(w_ref[...], x_ref[...], preferred_element_type=jnp.float32)  # (Cout, tn)
    o_ref[...] = jnp.maximum(y + b_ref[...], 0.0).astype(o_ref.dtype)


def _fused_agg(x, wt, b_col, *, out_dtype=jnp.float32, tn_max=32768, min_grid_steps=2):
    """x: (C, N) channels-first pixel columns (already summed over the 3 inputs);
    wt: (Cout, C); b_col: (Cout, 1).  Returns (Cout, N) in out_dtype.

    N (pixels) rides the lane axis everywhere -> unmasked lane-dense stores.
    Invariant: no reduction along the lane axis (ragged last block is safe).
    """
    C, N = x.shape
    Cout = wt.shape[0]

    # Lane tile: multiple of 128, big enough to amortize per-step overhead, but
    # aim for >= min_grid_steps grid steps so v7x's two TensorCores both work.
    tn = max(128, _round_up(pl.cdiv(N, min_grid_steps), 128))
    tn = min(tn, tn_max, _round_up(N, 128))
    grid = (pl.cdiv(N, tn),)

    out = pl.pallas_call(
        _agg_kernel,
        out_shape=jax.ShapeDtypeStruct((Cout, N), out_dtype),
        grid_spec=pltpu.PrefetchScalarGridSpec(
            num_scalar_prefetch=0,
            grid=grid,
            in_specs=[
                pl.BlockSpec((C, tn), lambda i: (0, i)),       # summed features
                pl.BlockSpec((Cout, C), lambda i: (0, 0)),     # weight, resident
                pl.BlockSpec((Cout, 1), lambda i: (0, 0)),     # bias, resident
            ],
            out_specs=pl.BlockSpec((Cout, tn), lambda i: (0, i)),
        ),
        # Working set is a few MiB even at tn=32768 with double buffering; the
        # default scoped VMEM limit is ample on v5e/v6e/v7x, so don't override it.
        compiler_params=pltpu.CompilerParams(
            dimension_semantics=("parallel",),
        ),
    )(x, wt, b_col)

    return out


def helper_model_agg(ipt1, ipt2, ipt3, point, w, b, *, out_dtype=jnp.float32):
    """Equivalent of HelperModelAgg.forward for the synthetic inner model.

    ipt1/ipt2/ipt3: (B, C, H, W) float32 (NCHW, PyTorch convention)
    point:          (B, P, 2) int32, (row, col) pixel coordinates
    w:              (C, Cout) float32, b: (1, Cout) float32
    returns:        (B, P, Cout) in out_dtype
    """
    B, C, H, W = ipt1.shape
    P = point.shape[1]
    Cout = w.shape[1]

    # --- point gather FIRST (per-pixel 1x1-conv commutes with sampling) -------
    # Coordinates are clamped into range (same clamp is applied in the reference
    # below so both paths share identical out-of-range semantics).
    py = jnp.clip(point[..., 0].astype(jnp.int32), 0, H - 1)        # (B, P)
    px = jnp.clip(point[..., 1].astype(jnp.int32), 0, W - 1)        # (B, P)
    flat_idx = py * W + px                                           # (B, P)

    def gather_pts(x):
        # NCHW flattened spatially is just a reshape (no transpose of the big array).
        xf = x.reshape(B, C, H * W)                                  # (B, C, HW)
        g = jnp.take_along_axis(xf, flat_idx[:, None, :], axis=2)    # (B, C, P)
        # Tiny (B, C, P) transpose -> channels-first pixel columns.
        return jnp.transpose(g, (1, 0, 2)).reshape(C, B * P)         # (C, B*P)

    # Pre-sum in the wrapper: XLA fuses gather+add, kernel sees a single stream.
    x = gather_pts(ipt1) + gather_pts(ipt2) + gather_pts(ipt3)       # (C, B*P)

    # Channels-first params for the lane-dense kernel.
    wt = jnp.transpose(w, (1, 0))                                    # (Cout, C)
    b_col = jnp.transpose(b, (1, 0))                                 # (Cout, 1)

    feat = _fused_agg(x, wt, b_col, out_dtype=out_dtype)             # (Cout, B*P)

    # (Cout, B*P) -> (B, P, Cout) to match the module's output convention.
    # NOTE: for large B*P keep the (Cout, B*P) layout for the consumer instead
    # (this transpose is an extra HBM pass of the largest array in that regime).
    return jnp.transpose(feat.reshape(Cout, B, P), (1, 2, 0))


def _reference(ipt1, ipt2, ipt3, point, w, b):
    # Pure-JAX reference: full feature map then gather (original formulation).
    # Same coordinate clamp as the kernel path for identical semantics.
    B, C, H, W = ipt1.shape
    s = jnp.transpose(ipt1 + ipt2 + ipt3, (0, 2, 3, 1))              # (B,H,W,C)
    feat = jnp.maximum(jnp.einsum("bhwc,cd->bhwd", s, w) + b[0], 0.0)
    py = jnp.clip(point[..., 0].astype(jnp.int32), 0, H - 1)
    px = jnp.clip(point[..., 1].astype(jnp.int32), 0, W - 1)
    b_idx = jnp.arange(B, dtype=jnp.int32)[:, None]
    return feat[b_idx, py, px]


if __name__ == "__main__":
    B, C, H, W = 2, 4, 16, 16
    Cout = 32
    P = 8

    key = jax.random.PRNGKey(0)
    k1, k2, k3, kw, kb, kpy, kpx = jax.random.split(key, 7)

    ipt1 = jax.random.normal(k1, (B, C, H, W), dtype=jnp.float32)
    ipt2 = jax.random.normal(k2, (B, C, H, W), dtype=jnp.float32)
    ipt3 = jax.random.normal(k3, (B, C, H, W), dtype=jnp.float32)

    # Deterministic synthetic parameters (1x1-conv equivalent).
    w = jax.random.normal(kw, (C, Cout), dtype=jnp.float32) * 0.1
    b = jax.random.normal(kb, (1, Cout), dtype=jnp.float32) * 0.1

    py = jax.random.randint(kpy, (B, P), 0, H, dtype=jnp.int32)
    px = jax.random.randint(kpx, (B, P), 0, W, dtype=jnp.int32)
    point = jnp.stack([py, px], axis=-1)                              # (B, P, 2)

    out = helper_model_agg(ipt1, ipt2, ipt3, point, w, b)             # f32 output
    out = jax.block_until_ready(out)

    ref = _reference(ipt1, ipt2, ipt3, point, w, b)
    assert out.shape == (B, P, Cout), out.shape
    assert jnp.allclose(out, ref, atol=1e-5, rtol=1e-5), "mismatch vs reference"

    print("KERNEL_OK")
</pallas_src>

<mosaic_0001>
module attributes {stable_mosaic.version = 11 : i64} {
  func.func @_agg_kernel(%arg0: i32, %arg1: memref<4x128xf32, #tpu.memory_space<vmem>>, %arg2: memref<32x4xf32, #tpu.memory_space<vmem>>, %arg3: memref<32x1xf32, #tpu.memory_space<vmem>>, %arg4: memref<32x128xf32, #tpu.memory_space<vmem>>) attributes {dimension_semantics = [#tpu.dimension_semantics<parallel>], iteration_bounds = array<i64: 1>, scalar_prefetch = 0 : i64, scratch_operands = 0 : i64, tpu.core_type = #tpu.core_type<tc>, window_params = [{transform_indices = @transform_0, window_bounds = array<i64: 4, 128>}, {pipeline_mode = #tpu.pipeline_mode<synchronous>, transform_indices = @transform_1, window_bounds = array<i64: 32, 4>}, {pipeline_mode = #tpu.pipeline_mode<synchronous>, transform_indices = @transform_2, window_bounds = array<i64: 32, 1>}, {transform_indices = @transform_3, window_bounds = array<i64: 32, 128>}]} {
    %c0 = arith.constant 0 : index
    %c0_0 = arith.constant 0 : index
    %0 = vector.load %arg2[%c0, %c0_0] : memref<32x4xf32, #tpu.memory_space<vmem>>, vector<32x4xf32>
    %c0_1 = arith.constant 0 : index
    %c0_2 = arith.constant 0 : index
    %1 = vector.load %arg1[%c0_1, %c0_2] : memref<4x128xf32, #tpu.memory_space<vmem>>, vector<4x128xf32>
    %cst = arith.constant dense<0.000000e+00> : vector<32x128xf32>
    %2 = tpu.matmul %0, %1, %cst {dimension_numbers = #tpu.dot_dimension_numbers<[1], [0], [0], [1], [0, 0, 1, 1], [], []>} : vector<32x4xf32>, vector<4x128xf32>, vector<32x128xf32> -> vector<32x128xf32>
    %c0_3 = arith.constant 0 : index
    %c0_4 = arith.constant 0 : index
    %3 = vector.load %arg3[%c0_3, %c0_4] : memref<32x1xf32, #tpu.memory_space<vmem>>, vector<32x1xf32>
    %4 = vector.broadcast %3 : vector<32x1xf32> to vector<32x128xf32>
    %5 = arith.addf %2, %4 : vector<32x128xf32>
    %cst_5 = arith.constant 0.000000e+00 : f32
    %6 = vector.broadcast %cst_5 : f32 to vector<32x128xf32>
    %7 = arith.maximumf %5, %6 : vector<32x128xf32>
    %c0_6 = arith.constant 0 : index
    %c0_7 = arith.constant 0 : index
    %8 = vector.load %arg4[%c0_6, %c0_7] : memref<32x128xf32, #tpu.memory_space<vmem>>, vector<32x128xf32>
    tpu.vector_store %arg4[%c0_6, %c0_7], %7 {strides = array<i32>} : memref<32x128xf32, #tpu.memory_space<vmem>>, vector<32x128xf32>,
    return
  }
  func.func @transform_0(%arg0: i32) -> (i32, i32) {
    %c0_i32 = arith.constant 0 : i32
    %c0_i32_0 = arith.constant 0 : i32
    return %c0_i32, %arg0 : i32, i32
  }
  func.func @transform_1(%arg0: i32) -> (i32, i32) {
    %c0_i32 = arith.constant 0 : i32
    %c0_i32_0 = arith.constant 0 : i32
    %c0_i32_1 = arith.constant 0 : i32
    return %c0_i32, %c0_i32_0 : i32, i32
  }
  func.func @transform_2(%arg0: i32) -> (i32, i32) {
    %c0_i32 = arith.constant 0 : i32
    %c0_i32_0 = arith.constant 0 : i32
    %c0_i32_1 = arith.constant 0 : i32
    return %c0_i32, %c0_i32_0 : i32, i32
  }
  func.func @transform_3(%arg0: i32) -> (i32, i32) {
    %c0_i32 = arith.constant 0 : i32
    %c0_i32_0 = arith.constant 0 : i32
    return %c0_i32, %arg0 : i32, i32
  }
}

</mosaic_0001>

<bundles_post_ra>
// kernel: tpu_custom_call.1
= control target key start
LH: loop header
LB: loop body
LE: loop exit
PB: predicated region body
PF: predicated region fallthrough
CT: control target
= control target key end

     0   :  { %vm56_vm0 = vcmask 1043456   ;;  %v112_v1 = vmov 0   ;;  %vm43_vm1 = vcmask 31744   ;;  %s172_s0 = inlined_call_operand.vmem [shape: f32[4,16], index: 0, kind: input, shape index: {}]   ;;  %s173_s1 = inlined_call_operand.vmem [shape: f32[32,4], index: 1, kind: input, shape index: {}]   ;;  %s174_s2 = inlined_call_operand.vmem [shape: f32[32,1], index: 2, kind: input, shape index: {}]   ;;  %s175_s3 = inlined_call_operand.vmem [shape: f32[32,16], index: 3, kind: output, shape index: {}]  }
   0x1   :  { %v18_v0 = vld [vmem:[%s172_s0] sm:$0xf]  ;;  %111 = vset.pattern.permute.xlu1 %v112_v1  ;;  %110 = vset.pattern.permute.xlu0 %v112_v1  ;;  %v15_v3 = vld [vmem:[%s173_s1 + $0x8] sm:$0xff]  ;;  %v16_v4 = vld [vmem:[%s173_s1 + $0x10] sm:$0xff] }
   0x2   :  { %v14_v2 = vld [vmem:[%s173_s1] sm:$0xff]  ;;  %101 = vmatpush.msk.msra.mxu0 %vm56_vm0, %v18_v0  ;;  %106 = vmatpush.msk.msra.mxu1 %vm56_vm0, %v18_v0  ;;  %v17_v5 = vld [vmem:[%s173_s1 + $0x18] sm:$0xff]  ;;  %v21_v6 = vld [vmem:[%s174_s2 + $0x10] sm:$0xff] }
   0x3   :  { %107 = vmatpush.msk.msra.mxu2 %vm56_vm0, %v18_v0  ;;  %108 = vmatpush.msk.msra.mxu3 %vm56_vm0, %v18_v0  ;;  %v19_v7 = vld [vmem:[%s174_s2] sm:$0xff]  ;;  %v22_v8 = vld [vmem:[%s174_s2 + $0x18] sm:$0xff]  ;;  %v20_v9 = vld [vmem:[%s174_s2 + $0x8] sm:$0xff] }
   0x4   :  { %102 = vmatmul.msk.f32.vlgmr.msra.gmra.mxu0 %vm43_vm1, %v14_v2  ;;  %103 = vmatmul.msk.f32.vlgmr.msra.gmra.mxu1 %vm43_vm1, %v15_v3 }
   0x5   :  { %104 = vmatmul.msk.f32.vlgmr.msra.gmra.mxu2 %vm43_vm1, %v16_v4  ;;  %105 = vmatmul.msk.f32.vlgmr.msra.gmra.mxu3 %vm43_vm1, %v17_v5 }
   0x6   :  { %35 = vperm.xlu1 %111, %v21_v6   ;;  %25 = vperm.xlu0 %110, %v19_v7  }
   0xe   :  { %40 = vperm.xlu1 %111, %v22_v8   ;;  %30 = vperm.xlu0 %110, %v20_v9  }
  0x78   :  { %v26_v10 = vpop.permute.xlu0 %25  ;;  %v36_v11 = vpop.permute.xlu1 %35 }
  0x80   :  { %v31_v12 = vpop.permute.xlu0 %30  ;;  %v41_v19 = vpop.permute.xlu1 %40 }
  0x81   :  { %v77_v13 = vpop.f32.mrf.mxu0  ;;  %v80_v14 = vpop.f32.mrf.mxu1 }
  0x82   :  { %v78_v15 = vadd.f32 %v77_v13, %v26_v10  ;;  %v81_v16 = vadd.f32 %v80_v14, %v31_v12 }
  0x84   :  { %v89_v17 = vmax.f32 %v78_v15, 0.0  ;;  %v90_v18 = vmax.f32 %v81_v16, 0.0 }
  0x86   :  { %93 = vst [vmem:[%s175_s3] sm:$0xff] %v89_v17 }
  0x87   :  { %94 = vst [vmem:[%s175_s3 + $0x8] sm:$0xff] %v90_v18 }
  0x88   :  { %v83_v20 = vpop.f32.mrf.mxu2  ;;  %v86_v21 = vpop.f32.mrf.mxu3 }
  0x89   :  { %v84_v22 = vadd.f32 %v83_v20, %v36_v11  ;;  %v87_v23 = vadd.f32 %v86_v21, %v41_v19 }
  0x8b   :  { %v91_v24 = vmax.f32 %v84_v22, 0.0  ;;  %v92_v25 = vmax.f32 %v87_v23, 0.0 }
  0x8d   :  { %95 = vst [vmem:[%s175_s3 + $0x10] sm:$0xff] %v91_v24 }
  0x8e   :  { %96 = vst [vmem:[%s175_s3 + $0x18] sm:$0xff] %v92_v25 }

</bundles_post_ra>
